<compile_context>
chip_gen: v6e
topology: v6e:2x2x1
jax: 0.10.0
libtpu: 0.0.40
codegen_flags: <defaults>
</compile_context>

<pallas_src>
import math

import jax
import jax.numpy as jnp
from jax import lax
from jax.experimental import pallas as pl
from jax.experimental.pallas import tpu as pltpu

_HALF_LOG_2PI = 0.5 * math.log(2.0 * math.pi)
_LANE = 128
_SUBLANE = 8
_VMEM_LIMIT_BYTES = 48 << 20     # explicit scoped-VMEM request; safe on v5e/v6e/v7x
_TARGET_BLOCK_BYTES = 4 << 20    # pipelined bytes per grid step (x2 when double-buffered)


# ---------------------------------------------------------------------------
# Tiling helpers
# ---------------------------------------------------------------------------
def _pick_tile_b(batch, row_bytes):
    """VMEM-budget-driven batch tile.

    Whole batch for B <= 1024 (single grid step).  Otherwise a multiple of 128
    (required by the lane-dense (1, tb) log-prob block) sized so one block set
    moves ~_TARGET_BLOCK_BYTES, floored at 512 rows and capped so the grid has
    >= 2 steps (lets dimension_semantics=("parallel",) shard the batch across
    both TensorCores on v7x)."""
    if batch <= 1024:
        return batch
    tb = max(512, _TARGET_BLOCK_BYTES // max(int(row_bytes), 1))
    tb = max(_LANE, (tb // _LANE) * _LANE)
    cap = max(_LANE, ((batch // 2) // _LANE) * _LANE)   # keep >= 2 grid steps
    return min(tb, cap)


def _resolve_tile(batch, row_bytes, tile_b, lane_dense):
    tb = _pick_tile_b(batch, row_bytes) if tile_b is None else int(tile_b)
    if tb >= batch:
        return batch
    mult = _LANE if lane_dense else _SUBLANE
    if tb % mult != 0:
        raise ValueError(
            f"tile_b={tb} must equal the full batch ({batch}) or be a "
            f"multiple of {mult}")
    return tb


def _maybe_bf16(x, w, use_bf16):
    if use_bf16:
        return x.astype(jnp.bfloat16), w.astype(jnp.bfloat16)
    return x, w


def _pack_params(b, log_std):
    # Row 0: linear bias; row 1: exp(-2*log_std).  One resident (2, N) block
    # replaces two (1, N) inputs.  exp() hoisted out of the kernel.
    return jnp.concatenate(
        [b.astype(jnp.float32), jnp.exp(-2.0 * log_std).astype(jnp.float32)],
        axis=0)


def _lp_bias_sum(log_std, n):
    # Scalar sum(log_std) + N * 0.5*log(2*pi), subtracted once after the reduce.
    return (jnp.sum(log_std) + n * _HALF_LOG_2PI).astype(jnp.float32).reshape(1)


def _compiler_params():
    return pltpu.CompilerParams(dimension_semantics=("parallel",),
                                vmem_limit_bytes=_VMEM_LIMIT_BYTES)


# ---------------------------------------------------------------------------
# Kernels
# ---------------------------------------------------------------------------
def _quad_row(diff, inv_var):
    # quad[0, r] = sum_n diff[r, n]^2 * inv_var[0, n]; contracting the last
    # dims on the MXU produces a lane-dense (1, tb) row directly (no masked
    # (tb, 1) stores, no sublane->lane relayout), and the MXU is otherwise
    # idle after the x @ W pass.
    sq = diff * diff
    return lax.dot_general(inv_var, sq, (((1,), (1,)), ((), ())),
                           preferred_element_type=jnp.float32)


def _logprob_kernel(x_ref, w_ref, params_ref, lpb_ref, a_ref, lp_ref):
    mean = jnp.dot(x_ref[...], w_ref[...],
                   preferred_element_type=jnp.float32) + params_ref[0:1, :]
    diff = a_ref[...].astype(jnp.float32) - mean
    quad = _quad_row(diff, params_ref[1:2, :])              # (1, tb)
    lp_ref[...] = (-0.5 * quad - lpb_ref[0]).astype(lp_ref.dtype)


def _mean_logprob_kernel(x_ref, w_ref, params_ref, lpb_ref, a_ref,
                         mean_ref, lp_ref):
    mean = jnp.dot(x_ref[...], w_ref[...],
                   preferred_element_type=jnp.float32) + params_ref[0:1, :]
    mean_ref[...] = mean.astype(mean_ref.dtype)
    diff = a_ref[...].astype(jnp.float32) - mean
    quad = _quad_row(diff, params_ref[1:2, :])
    lp_ref[...] = (-0.5 * quad - lpb_ref[0]).astype(lp_ref.dtype)


def _mean_kernel(x_ref, w_ref, b_ref, mean_ref):
    mean_ref[...] = (jnp.dot(x_ref[...], w_ref[...],
                             preferred_element_type=jnp.float32)
                     + b_ref[...]).astype(mean_ref.dtype)


# ---------------------------------------------------------------------------
# Wrappers
# ---------------------------------------------------------------------------
def _fused_in_specs(tb, K, N):
    return [
        pl.BlockSpec((tb, K), lambda i: (i, 0)),            # x        (batch-tiled)
        pl.BlockSpec((K, N), lambda i: (0, 0)),             # W        (resident)
        pl.BlockSpec((2, N), lambda i: (0, 0)),             # [b; inv_var] resident
        pl.BlockSpec(memory_space=pltpu.MemorySpace.SMEM),  # lp_bias_sum scalar
        pl.BlockSpec((tb, N), lambda i: (i, 0)),            # actions  (batch-tiled)
    ]


def diag_gaussian_log_probs(x, w, b, log_std, actions, tile_b=None,
                            use_bf16=False):
    """sum_N log N(actions; x @ W + b, exp(log_std)) -> (B, 1).

    Fused matmul + reduction, NO mean writeback (the common PPO loss path)."""
    B, K = x.shape
    N = w.shape[1]
    x, w = _maybe_bf16(x, w, use_bf16)
    row_bytes = K * x.dtype.itemsize + N * 4 + 4
    tb = _resolve_tile(B, row_bytes, tile_b, lane_dense=True)
    grid = (pl.cdiv(B, tb),)

    params = _pack_params(b, log_std)
    lpb = _lp_bias_sum(log_std, N)

    cost = pl.CostEstimate(
        flops=2 * B * K * N + 5 * B * N,
        transcendentals=0,
        bytes_accessed=(x.size * x.dtype.itemsize + w.size * w.dtype.itemsize
                        + 4 * (2 * N + 1 + B * N + B)))

    lp_row = pl.pallas_call(
        _logprob_kernel,
        out_shape=jax.ShapeDtypeStruct((1, B), jnp.float32),
        grid=grid,
        in_specs=_fused_in_specs(tb, K, N),
        out_specs=pl.BlockSpec((1, tb), lambda i: (0, i)),      # lane-dense lp
        compiler_params=_compiler_params(),
        cost_estimate=cost,
    )(x, w, params, lpb, actions)
    return jnp.reshape(lp_row, (B, 1))


def diag_gaussian_mean_and_log_probs(x, w, b, log_std, actions, tile_b=None,
                                     use_bf16=False):
    """One fused pass producing both mean (B, N) and log_probs (B, 1)."""
    B, K = x.shape
    N = w.shape[1]
    x, w = _maybe_bf16(x, w, use_bf16)
    row_bytes = K * x.dtype.itemsize + 2 * N * 4 + 4
    tb = _resolve_tile(B, row_bytes, tile_b, lane_dense=True)
    grid = (pl.cdiv(B, tb),)

    params = _pack_params(b, log_std)
    lpb = _lp_bias_sum(log_std, N)

    cost = pl.CostEstimate(
        flops=2 * B * K * N + 5 * B * N,
        transcendentals=0,
        bytes_accessed=(x.size * x.dtype.itemsize + w.size * w.dtype.itemsize
                        + 4 * (2 * N + 1 + 2 * B * N + B)))

    mean, lp_row = pl.pallas_call(
        _mean_logprob_kernel,
        out_shape=(jax.ShapeDtypeStruct((B, N), jnp.float32),
                   jax.ShapeDtypeStruct((1, B), jnp.float32)),
        grid=grid,
        in_specs=_fused_in_specs(tb, K, N),
        out_specs=(pl.BlockSpec((tb, N), lambda i: (i, 0)),     # mean (N kept as-is)
                   pl.BlockSpec((1, tb), lambda i: (0, i))),    # lane-dense lp
        compiler_params=_compiler_params(),
        cost_estimate=cost,
    )(x, w, params, lpb, actions)
    return mean, jnp.reshape(lp_row, (B, 1))


def diag_gaussian_mean(x, w, b, tile_b=None, use_bf16=False):
    """mean = x @ W + b  (used when only .mean / .mode() is needed)."""
    B, K = x.shape
    N = w.shape[1]
    x, w = _maybe_bf16(x, w, use_bf16)
    row_bytes = K * x.dtype.itemsize + N * 4
    tb = _resolve_tile(B, row_bytes, tile_b, lane_dense=False)
    grid = (pl.cdiv(B, tb),)

    cost = pl.CostEstimate(
        flops=2 * B * K * N, transcendentals=0,
        bytes_accessed=(x.size * x.dtype.itemsize + w.size * w.dtype.itemsize
                        + 4 * (N + B * N)))

    return pl.pallas_call(
        _mean_kernel,
        out_shape=jax.ShapeDtypeStruct((B, N), jnp.float32),
        grid=grid,
        in_specs=[pl.BlockSpec((tb, K), lambda i: (i, 0)),
                  pl.BlockSpec((K, N), lambda i: (0, 0)),
                  pl.BlockSpec((1, N), lambda i: (0, 0))],
        out_specs=pl.BlockSpec((tb, N), lambda i: (i, 0)),
        compiler_params=_compiler_params(),
        cost_estimate=cost,
    )(x, w, b.astype(jnp.float32))


def fixed_normal_entropy(log_std, batch):
    # Independent of x / actions -> plain JAX, no kernel launch.
    ent = jnp.sum(0.5 + _HALF_LOG_2PI + log_std).reshape(1, 1)
    return jnp.broadcast_to(ent, (batch, 1)).astype(jnp.float32)


# ---------------------------------------------------------------------------
# FixedNormal / DiagGaussian containers (mode == mean)
# ---------------------------------------------------------------------------
class FixedNormal:
    def __init__(self, x, w, b, log_std, use_bf16=False):
        self._x = x
        self._w = w
        self._b = b
        self._log_std = log_std
        self._use_bf16 = use_bf16
        self._std_row = jnp.exp(log_std)        # (1, N); broadcast lazily
        self._mean = None

    @property
    def mean(self):
        if self._mean is None:
            self._mean = diag_gaussian_mean(self._x, self._w, self._b,
                                            use_bf16=self._use_bf16)
        return self._mean

    @property
    def stddev(self):
        return jnp.broadcast_to(
            self._std_row, (self._x.shape[0], self._std_row.shape[-1]))

    def log_probs(self, actions):
        # lp-only fused kernel: no mean HBM writeback on the common PPO path.
        return diag_gaussian_log_probs(self._x, self._w, self._b,
                                       self._log_std, actions,
                                       use_bf16=self._use_bf16)

    def mean_and_log_probs(self, actions):
        # Single fused pass when both outputs are needed.
        mean, lp = diag_gaussian_mean_and_log_probs(
            self._x, self._w, self._b, self._log_std, actions,
            use_bf16=self._use_bf16)
        if self._mean is None:
            self._mean = mean
        return mean, lp

    def entropy(self):
        return fixed_normal_entropy(self._log_std, self._x.shape[0])

    def mode(self):
        return self.mean

    # TODO(synk): torch.distributions.Normal sampling (sample/rsample) is not
    # implemented; only the methods used by the spec (log_probs/entropy/mode).


class DiagGaussian:
    """JAX/Pallas port of the PyTorch DiagGaussian head."""

    def __init__(self, num_inputs, num_outputs, gain=0.01, key=None,
                 use_bf16=False):
        if key is None:
            key = jax.random.PRNGKey(0)
        # Orthogonal init scaled by gain for the weight, zeros for bias and
        # log_std — matches the PyTorch init_() wiring.
        w_pt = jax.nn.initializers.orthogonal(scale=gain)(
            key, (num_outputs, num_inputs), jnp.float32)    # PyTorch (out, in)
        self.w = jnp.transpose(w_pt)                         # (in, out) for x @ W
        self.b = jnp.zeros((1, num_outputs), jnp.float32)
        self.log_std = jnp.zeros((1, num_outputs), jnp.float32)
        self._num_outputs = num_outputs
        self._use_bf16 = use_bf16

    def __call__(self, x):
        return FixedNormal(x, self.w, self.b, self.log_std,
                           use_bf16=self._use_bf16)

    @property
    def output_size(self):
        return self._num_outputs


if __name__ == "__main__":
    B, NUM_INPUTS, NUM_OUTPUTS = 8, 32, 8

    key = jax.random.PRNGKey(0)
    k_x, k_a, k_w, k_x2, k_a2 = jax.random.split(key, 5)
    x = jax.random.normal(k_x, (B, NUM_INPUTS), jnp.float32)
    actions = jax.random.normal(k_a, (B, NUM_OUTPUTS), jnp.float32)

    head = DiagGaussian(NUM_INPUTS, NUM_OUTPUTS, gain=0.01, key=k_w)

    # Module-style path: lp-only kernel, mean-only kernel, plain-JAX entropy.
    dist = head(x)
    lp = jax.block_until_ready(dist.log_probs(actions))
    mean = jax.block_until_ready(dist.mean)
    std = jax.block_until_ready(dist.stddev)
    ent = jax.block_until_ready(dist.entropy())
    mode = jax.block_until_ready(dist.mode())

    # Fused path (mean + log-probs in one pass).
    mean_f, lp_f = diag_gaussian_mean_and_log_probs(
        x, head.w, head.b, head.log_std, actions)
    mean_f = jax.block_until_ready(mean_f)
    lp_f = jax.block_until_ready(lp_f)

    # Pure-JAX reference.
    mean_ref = x @ head.w + head.b
    std_ref = jnp.broadcast_to(jnp.exp(head.log_std), mean_ref.shape)
    lp_ref = jnp.sum(
        -0.5 * (actions - mean_ref) ** 2 / std_ref ** 2
        - head.log_std - _HALF_LOG_2PI, axis=-1, keepdims=True)
    ent_ref = jnp.broadcast_to(
        jnp.sum(0.5 + _HALF_LOG_2PI + head.log_std, axis=-1, keepdims=True),
        (B, 1))

    assert mean.shape == (B, NUM_OUTPUTS) and std.shape == (B, NUM_OUTPUTS)
    assert lp.shape == (B, 1) and ent.shape == (B, 1)
    assert jnp.allclose(mean, mean_ref, atol=1e-5)
    assert jnp.allclose(mode, mean_ref, atol=1e-5)
    assert jnp.allclose(std, std_ref, atol=1e-6)
    assert jnp.allclose(lp, lp_ref, atol=1e-4)
    assert jnp.allclose(ent, ent_ref, atol=1e-5)
    assert jnp.allclose(mean_f, mean_ref, atol=1e-5)
    assert jnp.allclose(lp_f, lp_ref, atol=1e-4)

    # Multi-tile grid with a partial last tile: B=300, tile_b=128 -> 3 steps.
    B2 = 300
    x2 = jax.random.normal(k_x2, (B2, NUM_INPUTS), jnp.float32)
    a2 = jax.random.normal(k_a2, (B2, NUM_OUTPUTS), jnp.float32)
    mean2, lp2 = diag_gaussian_mean_and_log_probs(
        x2, head.w, head.b, head.log_std, a2, tile_b=128)
    lp2_only = diag_gaussian_log_probs(
        x2, head.w, head.b, head.log_std, a2, tile_b=128)
    mean2_only = diag_gaussian_mean(x2, head.w, head.b, tile_b=128)
    mean2 = jax.block_until_ready(mean2)
    lp2 = jax.block_until_ready(lp2)
    lp2_only = jax.block_until_ready(lp2_only)
    mean2_only = jax.block_until_ready(mean2_only)

    mean2_ref = x2 @ head.w + head.b
    lp2_ref = jnp.sum(
        -0.5 * (a2 - mean2_ref) ** 2 * jnp.exp(-2.0 * head.log_std)
        - head.log_std - _HALF_LOG_2PI, axis=-1, keepdims=True)
    assert jnp.allclose(mean2, mean2_ref, atol=1e-5)
    assert jnp.allclose(mean2_only, mean2_ref, atol=1e-5)
    assert jnp.allclose(lp2, lp2_ref, atol=1e-4)
    assert jnp.allclose(lp2_only, lp2_ref, atol=1e-4)

    # Optional bf16-input path (dot accumulates f32, elementwise stays f32).
    lp_bf16 = jax.block_until_ready(diag_gaussian_log_probs(
        x, head.w, head.b, head.log_std, actions, use_bf16=True))
    assert jnp.allclose(lp_bf16, lp_ref, atol=5e-2)

    print("KERNEL_OK")
</pallas_src>

<mosaic_0001>
module attributes {stable_mosaic.version = 11 : i64} {
  func.func @_logprob_kernel(%arg0: i32, %arg1: memref<8x32xf32, #tpu.memory_space<vmem>>, %arg2: memref<32x8xf32, #tpu.memory_space<vmem>>, %arg3: memref<2x8xf32, #tpu.memory_space<vmem>>, %arg4: memref<1xf32, #tpu.memory_space<smem>>, %arg5: memref<8x8xf32, #tpu.memory_space<vmem>>, %arg6: memref<1x8xf32, #tpu.memory_space<vmem>>) attributes {dimension_semantics = [#tpu.dimension_semantics<parallel>], iteration_bounds = array<i64: 1>, scalar_prefetch = 0 : i64, scratch_operands = 0 : i64, tpu.core_type = #tpu.core_type<tc>, window_params = [{transform_indices = @transform_0, window_bounds = array<i64: 8, 32>}, {pipeline_mode = #tpu.pipeline_mode<synchronous>, transform_indices = @transform_1, window_bounds = array<i64: 32, 8>}, {pipeline_mode = #tpu.pipeline_mode<synchronous>, transform_indices = @transform_2, window_bounds = array<i64: 2, 8>}, {transform_indices = @transform_3, window_bounds = array<i64: 1>}, {transform_indices = @transform_4, window_bounds = array<i64: 8, 8>}, {transform_indices = @transform_5, window_bounds = array<i64: 1, 8>}]} {
    %c0 = arith.constant 0 : index
    %c0_0 = arith.constant 0 : index
    %0 = vector.load %arg1[%c0, %c0_0] : memref<8x32xf32, #tpu.memory_space<vmem>>, vector<8x32xf32>
    %c0_1 = arith.constant 0 : index
    %c0_2 = arith.constant 0 : index
    %1 = vector.load %arg2[%c0_1, %c0_2] : memref<32x8xf32, #tpu.memory_space<vmem>>, vector<32x8xf32>
    %cst = arith.constant dense<0.000000e+00> : vector<8x8xf32>
    %2 = tpu.matmul %0, %1, %cst {dimension_numbers = #tpu.dot_dimension_numbers<[1], [0], [0], [1], [0, 0, 1, 1], [], []>} : vector<8x32xf32>, vector<32x8xf32>, vector<8x8xf32> -> vector<8x8xf32>
    %c0_3 = arith.constant 0 : index
    %c0_4 = arith.constant 0 : index
    %3 = vector.load %arg3[%c0_3, %c0_4] : memref<2x8xf32, #tpu.memory_space<vmem>>, vector<1x8xf32>
    %4 = vector.broadcast %3 : vector<1x8xf32> to vector<8x8xf32>
    %5 = arith.addf %2, %4 : vector<8x8xf32>
    %c0_5 = arith.constant 0 : index
    %c0_6 = arith.constant 0 : index
    %6 = vector.load %arg5[%c0_5, %c0_6] : memref<8x8xf32, #tpu.memory_space<vmem>>, vector<8x8xf32>
    %7 = arith.subf %6, %5 : vector<8x8xf32>
    %c1 = arith.constant 1 : index
    %c0_7 = arith.constant 0 : index
    %8 = vector.load %arg3[%c1, %c0_7] : memref<2x8xf32, #tpu.memory_space<vmem>>, vector<1x8xf32>
    %9 = arith.mulf %7, %7 : vector<8x8xf32>
    %cst_8 = arith.constant dense<0.000000e+00> : vector<1x8xf32>
    %10 = tpu.matmul %8, %9, %cst_8 {dimension_numbers = #tpu.dot_dimension_numbers<[1], [1], [0], [0], [0, 0, 1, 0], [], []>} : vector<1x8xf32>, vector<8x8xf32>, vector<1x8xf32> -> vector<1x8xf32>
    %cst_9 = arith.constant -5.000000e-01 : f32
    %11 = vector.broadcast %cst_9 : f32 to vector<1x8xf32>
    %12 = arith.mulf %11, %10 : vector<1x8xf32>
    %c0_10 = arith.constant 0 : index
    %13 = memref.load %arg4[%c0_10] : memref<1xf32, #tpu.memory_space<smem>>
    %14 = vector.broadcast %13 : f32 to vector<1x8xf32>
    %15 = arith.subf %12, %14 : vector<1x8xf32>
    %c0_11 = arith.constant 0 : index
    %c0_12 = arith.constant 0 : index
    %16 = vector.load %arg6[%c0_11, %c0_12] : memref<1x8xf32, #tpu.memory_space<vmem>>, vector<1x8xf32>
    tpu.vector_store %arg6[%c0_11, %c0_12], %15 {strides = array<i32>} : memref<1x8xf32, #tpu.memory_space<vmem>>, vector<1x8xf32>,
    return
  }
  func.func @transform_0(%arg0: i32) -> (i32, i32) {
    %c0_i32 = arith.constant 0 : i32
    %c0_i32_0 = arith.constant 0 : i32
    return %arg0, %c0_i32 : i32, i32
  }
  func.func @transform_1(%arg0: i32) -> (i32, i32) {
    %c0_i32 = arith.constant 0 : i32
    %c0_i32_0 = arith.constant 0 : i32
    %c0_i32_1 = arith.constant 0 : i32
    return %c0_i32, %c0_i32_0 : i32, i32
  }
  func.func @transform_2(%arg0: i32) -> (i32, i32) {
    %c0_i32 = arith.constant 0 : i32
    %c0_i32_0 = arith.constant 0 : i32
    %c0_i32_1 = arith.constant 0 : i32
    return %c0_i32, %c0_i32_0 : i32, i32
  }
  func.func @transform_3(%arg0: i32) -> i32 {
    %c0_i32 = arith.constant 0 : i32
    %c0_i32_0 = arith.constant 0 : i32
    return %c0_i32 : i32
  }
  func.func @transform_4(%arg0: i32) -> (i32, i32) {
    %c0_i32 = arith.constant 0 : i32
    %c0_i32_0 = arith.constant 0 : i32
    return %arg0, %c0_i32 : i32, i32
  }
  func.func @transform_5(%arg0: i32) -> (i32, i32) {
    %c0_i32 = arith.constant 0 : i32
    %c0_i32_0 = arith.constant 0 : i32
    return %c0_i32, %arg0 : i32, i32
  }
}

</mosaic_0001>

<bundles_post_ra>
// kernel: tpu_custom_call.1
= control target key start
LH: loop header
LB: loop body
LE: loop exit
PB: predicated region body
PF: predicated region fallthrough
CT: control target
= control target key end

     0   :  { %v259_v1 = vmov 0.0   ;;  %vm260_vm0 = vmmov 0   ;;  %s322_s0 = inlined_call_operand.vmem [shape: f32[8,32], index: 0, kind: input, shape index: {}]   ;;  %s323_s1 = inlined_call_operand.vmem [shape: f32[32,8], index: 1, kind: input, shape index: {}]   ;;  %s324_s2 = inlined_call_operand.vmem [shape: f32[2,8], index: 2, kind: input, shape index: {}]   ;;  %s325_s3 = inlined_call_operand.<no memory space> [shape: f32[1], index: 3, kind: input, shape index: {}]   ;;  %s326_s4 = inlined_call_operand.vmem [shape: f32[8,8], index: 4, kind: input, shape index: {}]   ;;  %s327_s5 = inlined_call_operand.hbm [shape: f32[1,8], index: 5, kind: output, shape index: {}]  }
   0x1   :  { %v26_v0 = vld [vmem:[%s323_s1 + $0x18] sm:$0xff]  ;;  %218 = vmatprep.subr.mxu0 %v259_v1  ;;  %v25_v2 = vld [vmem:[%s323_s1 + $0x10] sm:$0xff]  ;;  %226 = vmatprep.mubr.msk.f32.mxu0 %vm260_vm0, %v259_v1 }
   0x2   :  { %219 = vmatpush3.msra.mxu0 %v26_v0  ;;  %229 = vmatprep.subr.mxu1 %v259_v1 }
   0x3   :  { %11 = vsyncpa [#allocation4], 0  ;;  %220 = vmatprep.subr.mxu0 %v259_v1  ;;  %v24_v3 = vld [vmem:[%s323_s1 + $0x8] sm:$0xff]  ;;  %231 = vmatprep.mubr.msk.f32.mxu1 %vm260_vm0, %v259_v1  ;;  %v23_v4 = vld [vmem:[%s323_s1] sm:$0xff]  ;;  %vm32_vm1 = vcmask 261120   ;;  %vm110_vm2 = vcmask 64512   ;;  %v189_v15 = vstv %s325_s3 }
   0x4   :  { %221 = vmatpush3.msra.mxu0 %v25_v2  ;;  %v22_v5 = vld [vmem:[%s322_s0] sm:$0xff]  ;;  %s261_s9 = smov [#allocation3]   ;;  %vm191_vm3 = vcmask 57344  }
   0x5   :  { %222 = vmatprep.subr.mxu0 %v259_v1  ;;  %v207_v6 = vld [vmem:[%s324_s2] ss:$0 sm:$0xff]  ;;  %v108_v13 = vld [vmem:[%s324_s2 + $0x1] sm:$0x1]  ;;  %s199_s10 = sshll.u32 %s261_s9, 4  ;;  %s200_s10 = int_to_ptr.vmem [resolvable:$true] %s199_s10 }
   0x6   :  { %223 = vmatpush3.msra.mxu0 %v24_v3  ;;  %v106_v8 = vld [vmem:[%s326_s4] sm:$0xff]  ;;  %s237_s4 = scalar_lea.vmem %s200_s10, 16  ;;  %s241_s11 = scalar_lea.vmem %s200_s10, 32 }
   0x7   :  { %224 = vmatprep.subr.mxu0 %v259_v1  ;;  %p238_p0 = scmp.ne.s32.totalorder %s200_s10, %s237_s4  ;;  %p242_p1 = scmp.lt.s32.totalorder %s200_s10, %s200_s10 }
   0x8   :  { %225 = vmatpush3.msra.mxu0 %v23_v4  ;;  %p243_p2 = scmp.lt.s32.totalorder %s241_s11, %s237_s4 }
   0x9   :  { %227 = vmatmul.mubr.msk.f32.vlgmr.msra.gmra.mxu0 %vm32_vm1, %v22_v5 }
   0xa   :  { %p244_p3 = por %p243_p2, %p242_p1 }
   0xc   :  { %p245_p4 = pnand %p244_p3, %p238_p0 }
  0xc9   :  { %v102_v7 = vpop.f32.mrf.mxu0 }
  0xca   :  { %v103_v9 = vadd.f32 %v207_v6, %v102_v7 }
  0xcb   :  { %v228_v10 = vpop.f32.mrf.mxu0 }
  0xcc   :  { %v107_v11 = vsub.f32 %v106_v8, %v103_v9 }
  0xce   :  { %v109_v12 = vmul.f32 %v107_v11, %v107_v11 }
  0xd0   :  { %230 = vmatpush3.xpose.msk.msra.mxu1 %vm110_vm2, %v109_v12 }
  0xd3   :  { %232 = vmatmul.mubr.msk.f32.vlgmr.msra.gmra.mxu1 %vm110_vm2, %v108_v13 }
 0x193   :  { %v183_v14 = vpop.f32.mrf.mxu1 }
 0x194   :  { %v187_v16 = vmul.f32 -0.5, %v183_v14 }
 0x195   :  { %v233_v17 = vpop.f32.mrf.mxu1 }
 0x196   :  { %v190_v18 = vsub.f32 %v187_v16, %v189_v15 }
 0x198   :  { %192 = vst.msk [vmem:[#allocation3] sm:$0x1] %vm191_vm3, %v190_v18 }
 0x199   :  { %248 = shalt.err (!%p245_p4)
}
 0x19a   :  { %202 = dma.vmem_to_hbm [thread:$0]  %s200_s10, 16, %s327_s5, [#allocation4]  }
 0x19b   :  { %257 = dma.done.wait [#allocation4], 16  }
 0x19c   :  { %258 = vsyncadd [#allocation4], 4294967280 }
 0x19d   :  { %206 = vsyncpa [#allocation4], 1 }

</bundles_post_ra>
